<compile_context>
chip_gen: v7x
topology: tpu7x:2x2x1
jax: 0.10.0
libtpu: 0.0.40
codegen_flags: <defaults>
</compile_context>

<pallas_src>
import math
from functools import partial

import jax
import jax.numpy as jnp
from jax.experimental import pallas as pl
from jax.experimental.pallas import tpu as pltpu

_LOG2 = math.log(2.0)


# --------------------------------------------------------------------------
# Fused kernel: similarity + ontology CE + prototype propagation/update +
# prototypical (negative squared distance) logits.
# --------------------------------------------------------------------------
def _proto_fused_kernel(inst_ref, e_ref, rel_ref, toh_ref, cnt_ref,
                        logits_ref, loss_ref, proto_ref, *, proto_emb_ratio):
    f32 = jnp.float32
    bf16 = jnp.bfloat16

    inst = inst_ref[...]                 # [B, H] f32   instance embeddings
    E = e_ref[...]                       # [P, H] f32   prototype table
    rel = rel_ref[...]                   # [R, H, H] bf16
    toh = toh_ref[...]                   # [B, P] f32   one-hot(labels_unique), 0-row if padded
    cnt = cnt_ref[...]                   # [R, B, P] f32 masked head-id histogram

    R_, B_, P_ = cnt.shape
    H_ = E.shape[1]

    E_bf = E.astype(bf16)

    # target prototype rows p_t = E[labels_unique] (exact f32 gather via one-hot matmul;
    # also reused for the f32 proto-update delta).
    e_t = jnp.dot(toh, E, preferred_element_type=f32)                        # [B, H] f32

    # HR[r, h, :] = E[h] @ rel[r]    (bf16 MXU, f32 accumulate; batched over r)
    E_b = jnp.broadcast_to(E_bf[None, :, :], (R_, P_, H_))
    HR = jnp.einsum('rpe,red->rpd', E_b, rel, preferred_element_type=f32)    # [R, P, H]
    HR_bf = HR.astype(bf16)

    # similarity logits G[r, b, h] = (E[h] @ rel[r]) . p_t[b]
    et_b = jnp.broadcast_to(e_t.astype(bf16)[None, :, :], (R_, B_, H_))
    G = jnp.einsum('rbd,rhd->rbh', et_b, HR_bf, preferred_element_type=f32)  # [R, B, P]

    # ontology cross-entropy (mean over num_unique * R * P entries):
    #   masked entries contribute softplus(1 - 2*sigmoid(G)) with multiplicity cnt,
    #   every other entry of a valid row contributes log(2) (incl. the [0]=1.0 quirk).
    s = jax.nn.sigmoid(G)
    sp = jnp.log(1.0 + jnp.exp(1.0 - 2.0 * s))          # softplus; argument in [-1, 1]
    masked_sum = jnp.sum(cnt * sp)
    n_masked = jnp.sum(cnt)
    num_unique = jnp.sum(toh)                           # scalar == number of unique labels
    total = num_unique * float(R_ * P_)
    ce = (masked_sum + (total - n_masked) * _LOG2) / jnp.maximum(total, 1.0)
    loss_ref[0, 0] = ce

    # prototype propagation: mean over masked (r, j) of HR[r, head, :]
    cnt_bf = cnt.astype(bf16)                           # small integer counts, exact in bf16
    prop = jnp.sum(jnp.einsum('rbh,rhd->rbd', cnt_bf, HR_bf,
                              preferred_element_type=f32), axis=0)           # [B, H] f32
    num_prop = jnp.sum(jnp.sum(cnt, axis=0), axis=1, keepdims=True)          # [B, 1]
    prop_mean = prop / jnp.maximum(num_prop, 1.0)
    delta = (1.0 - proto_emb_ratio) * (prop_mean - e_t)
    delta = jnp.where(num_prop > 0.0, delta, 0.0)
    # scatter via toh^T @ delta (contract dim 0 with dim 0; no transposed input needed)
    upd = jax.lax.dot_general(toh, delta, (((0,), (0,)), ((), ())),
                              preferred_element_type=f32)                    # [P, H]
    proto_new = E + upd
    proto_ref[...] = proto_new

    # prototypical logits: -||p - x||^2 = 2 x.p - ||x||^2 - ||p||^2 (f32 Gram form)
    cross = jax.lax.dot_general(inst, proto_new, (((1,), (1,)), ((), ())),
                                preferred_element_type=f32)                  # [B, P]
    x2 = jnp.sum(inst * inst, axis=1, keepdims=True)                         # [B, 1]
    p2 = jnp.sum(proto_new * proto_new, axis=1)                              # [P]
    logits_ref[...] = 2.0 * cross - x2 - p2[None, :]


def _full_spec(shape):
    n = len(shape)
    return pl.BlockSpec(shape, lambda i, n=n: (0,) * n)


# --------------------------------------------------------------------------
# Proto.forward — jittable end-to-end.  Data-dependent bookkeeping (unique
# labels, masking, head-id histogram) is cheap JAX glue on tiny int tensors;
# every matmul, the CE reduction, the proto update and the distance logits
# live in ONE Pallas kernel.
# --------------------------------------------------------------------------
@partial(jax.jit, static_argnames=("proto_emb_ratio",))
def proto_forward(proto_table, instance_embedding, relation_embedding,
                  rel_label_ids, labels, *, proto_emb_ratio):
    P, H = proto_table.shape
    B = labels.shape[0]
    R = relation_embedding.shape[0]
    f32 = jnp.float32

    # ---- onto_learn bookkeeping (glue; jit-safe fixed-size unique + masking) ----
    labels_unique, index_list = jnp.unique(labels, return_inverse=True,
                                           size=B, fill_value=P)
    # reproduces the original `index = index_list[k]` batch-row indexing quirk
    sel = rel_label_ids[index_list]                                # [B, R, P]
    toh = jax.nn.one_hot(labels_unique, P, dtype=f32)              # [B, P] (0-row if padded)
    valid_k = labels_unique < P                                    # k < num_unique
    row_valid = jnp.sum(sel, axis=2) != 0                          # i-level `continue` gate
    mask = (sel != P) & row_valid[:, :, None] & valid_k[:, None, None]
    maskf = mask.astype(f32)

    # compact masked head-id histogram cnt[b, r, h]  (replaces the dense [R,B,P,P] one-hot)
    bidx = jnp.arange(B)[:, None, None]
    ridx = jnp.arange(R)[None, :, None]
    cnt = jnp.zeros((B, R, P), f32).at[bidx, ridx, sel].add(maskf, mode="drop")
    cnt_rbp = jnp.transpose(cnt, (1, 0, 2))                        # [R, B, P]

    rel_bf = relation_embedding.astype(jnp.bfloat16)               # bf16 MXU operand

    kernel = partial(_proto_fused_kernel, proto_emb_ratio=float(proto_emb_ratio))
    logits, loss, proto_new = pl.pallas_call(
        kernel,
        out_shape=(jax.ShapeDtypeStruct((B, P), f32),
                   jax.ShapeDtypeStruct((1, 1), f32),
                   jax.ShapeDtypeStruct((P, H), f32)),
        grid=(1,),
        in_specs=[_full_spec((B, H)),
                  _full_spec((P, H)),
                  _full_spec((R, H, H)),
                  _full_spec((B, P)),
                  _full_spec((R, B, P))],
        out_specs=(_full_spec((B, P)),
                   pl.BlockSpec(memory_space=pltpu.MemorySpace.SMEM),
                   _full_spec((P, H))),
        compiler_params=pltpu.CompilerParams(
            dimension_semantics=("arbitrary",),
            vmem_limit_bytes=32 * 1024 * 1024),
    )(instance_embedding, proto_table, rel_bf, toh, cnt_rbp)

    # early-return branch of onto_learn (`torch.sum(rel_label_ids) == 0`) -> loss = 0
    loss_ol = jnp.where(jnp.sum(rel_label_ids) == 0, jnp.asarray(0.0, f32), loss[0, 0])
    return logits, loss_ol, proto_new


if __name__ == "__main__":
    # small shapes: proto_size=8, hidden=32, num_rel=4, batch=6
    P, H, R, B = 8, 32, 4, 6
    proto_emb_ratio = 0.5

    key = jax.random.PRNGKey(0)
    k1, k2, k3, k4, k5 = jax.random.split(key, 5)

    # nn.Embedding(proto_size, hidden) weight ~ N(0, 1)
    proto_table = jax.random.normal(k1, (P, H), jnp.float32)
    instance_embedding = jax.random.normal(k2, (B, H), jnp.float32)
    relation_embedding = jax.random.normal(k3, (R, H, H), jnp.float32) / jnp.sqrt(H)
    # ids in [0, P]; value == P means "no head"
    rel_label_ids = jax.random.randint(k4, (B, R, P), 0, P + 1, dtype=jnp.int32)
    labels = jax.random.randint(k5, (B,), 0, P, dtype=jnp.int32)

    logits, loss_ol, proto_embedding = proto_forward(
        proto_table, instance_embedding, relation_embedding, rel_label_ids, labels,
        proto_emb_ratio=proto_emb_ratio)

    jax.block_until_ready((logits, loss_ol, proto_embedding))
    assert logits.shape == (B, P)
    assert proto_embedding.shape == (P, H)
    assert bool(jnp.isfinite(loss_ol))
    assert bool(jnp.all(jnp.isfinite(logits)))
    print("KERNEL_OK")
</pallas_src>

<mosaic_0001>
module attributes {stable_mosaic.version = 11 : i64} {
  func.func private @main(%arg0: i32) attributes {dimension_semantics = [#tpu.dimension_semantics<core_parallel>], iteration_bounds = array<i64: 2>, tpu.core_type = #tpu.core_type<sc_scalar_subcore>, window_params = []} {
    return
  }
}

module attributes {stable_mosaic.version = 11 : i64} {
  func.func private @main(%arg0: i32) attributes {dimension_semantics = [#tpu.dimension_semantics<core_parallel>], iteration_bounds = array<i64: 2>, tpu.core_type = #tpu.core_type<sc_scalar_subcore>, window_params = []} {
    return
  }
}

module attributes {stable_mosaic.version = 11 : i64} {
  func.func @_proto_fused_kernel(%arg0: i32, %arg1: memref<6x32xf32, #tpu.memory_space<vmem>>, %arg2: memref<8x32xf32, #tpu.memory_space<vmem>>, %arg3: memref<4x32x32xbf16, #tpu.memory_space<vmem>>, %arg4: memref<6x8xf32, #tpu.memory_space<vmem>>, %arg5: memref<4x6x8xf32, #tpu.memory_space<vmem>>, %arg6: memref<6x8xf32, #tpu.memory_space<vmem>>, %arg7: memref<1x1xf32, #tpu.memory_space<smem>>, %arg8: memref<8x32xf32, #tpu.memory_space<vmem>>) attributes {dimension_semantics = [#tpu.dimension_semantics<arbitrary>], iteration_bounds = array<i64: 1>, scalar_prefetch = 0 : i64, scratch_operands = 0 : i64, tpu.core_type = #tpu.core_type<tc>, window_params = [{pipeline_mode = #tpu.pipeline_mode<synchronous>, transform_indices = @transform_0, window_bounds = array<i64: 6, 32>}, {pipeline_mode = #tpu.pipeline_mode<synchronous>, transform_indices = @transform_1, window_bounds = array<i64: 8, 32>}, {pipeline_mode = #tpu.pipeline_mode<synchronous>, transform_indices = @transform_2, window_bounds = array<i64: 4, 32, 32>}, {pipeline_mode = #tpu.pipeline_mode<synchronous>, transform_indices = @transform_3, window_bounds = array<i64: 6, 8>}, {pipeline_mode = #tpu.pipeline_mode<synchronous>, transform_indices = @transform_4, window_bounds = array<i64: 4, 6, 8>}, {pipeline_mode = #tpu.pipeline_mode<synchronous>, transform_indices = @transform_5, window_bounds = array<i64: 6, 8>}, {transform_indices = @transform_6, window_bounds = array<i64: 1, 1>}, {pipeline_mode = #tpu.pipeline_mode<synchronous>, transform_indices = @transform_7, window_bounds = array<i64: 8, 32>}]} {
    %c0 = arith.constant 0 : index
    %c0_0 = arith.constant 0 : index
    %0 = vector.load %arg1[%c0, %c0_0] : memref<6x32xf32, #tpu.memory_space<vmem>>, vector<6x32xf32>
    %c0_1 = arith.constant 0 : index
    %c0_2 = arith.constant 0 : index
    %1 = vector.load %arg2[%c0_1, %c0_2] : memref<8x32xf32, #tpu.memory_space<vmem>>, vector<8x32xf32>
    %c0_3 = arith.constant 0 : index
    %c0_4 = arith.constant 0 : index
    %c0_5 = arith.constant 0 : index
    %2 = vector.load %arg3[%c0_3, %c0_4, %c0_5] : memref<4x32x32xbf16, #tpu.memory_space<vmem>>, vector<4x32x32xbf16>
    %c0_6 = arith.constant 0 : index
    %c0_7 = arith.constant 0 : index
    %3 = vector.load %arg4[%c0_6, %c0_7] : memref<6x8xf32, #tpu.memory_space<vmem>>, vector<6x8xf32>
    %c0_8 = arith.constant 0 : index
    %c0_9 = arith.constant 0 : index
    %c0_10 = arith.constant 0 : index
    %4 = vector.load %arg5[%c0_8, %c0_9, %c0_10] : memref<4x6x8xf32, #tpu.memory_space<vmem>>, vector<4x6x8xf32>
    %5 = arith.truncf %1 : vector<8x32xf32> to vector<8x32xbf16>
    %cst = arith.constant dense<0.000000e+00> : vector<6x32xf32>
    %6 = tpu.matmul %3, %1, %cst {dimension_numbers = #tpu.dot_dimension_numbers<[1], [0], [0], [1], [0, 0, 1, 1], [], []>} : vector<6x8xf32>, vector<8x32xf32>, vector<6x32xf32> -> vector<6x32xf32>
    %7 = vector.shape_cast %5 : vector<8x32xbf16> to vector<1x8x32xbf16>
    %8 = vector.shape_cast %7 : vector<1x8x32xbf16> to vector<1x8x32xbf16>
    %9 = vector.broadcast %8 : vector<1x8x32xbf16> to vector<4x8x32xbf16>
    "tpu.trace_start"() <{level = 10 : i32, message = "rpe,red->rpd"}> : () -> ()
    %cst_11 = arith.constant dense<0.000000e+00> : vector<4x8x32xf32>
    %10 = tpu.matmul %9, %2, %cst_11 {dimension_numbers = #tpu.dot_dimension_numbers<[2], [1], [1], [2], [0, 0, 0, 1, 1, 2], [0], [0]>} : vector<4x8x32xbf16>, vector<4x32x32xbf16>, vector<4x8x32xf32> -> vector<4x8x32xf32>
    "tpu.trace_stop"() : () -> ()
    %11 = arith.truncf %10 : vector<4x8x32xf32> to vector<4x8x32xbf16>
    %12 = arith.truncf %6 : vector<6x32xf32> to vector<6x32xbf16>
    %13 = vector.shape_cast %12 : vector<6x32xbf16> to vector<1x6x32xbf16>
    %14 = vector.shape_cast %13 : vector<1x6x32xbf16> to vector<1x6x32xbf16>
    %15 = vector.broadcast %14 : vector<1x6x32xbf16> to vector<4x6x32xbf16>
    "tpu.trace_start"() <{level = 10 : i32, message = "rbd,rhd->rbh"}> : () -> ()
    %cst_12 = arith.constant dense<0.000000e+00> : vector<4x6x8xf32>
    %16 = tpu.matmul %15, %11, %cst_12 {dimension_numbers = #tpu.dot_dimension_numbers<[2], [2], [1], [1], [0, 0, 0, 1, 1, 1], [0], [0]>} : vector<4x6x32xbf16>, vector<4x8x32xbf16>, vector<4x6x8xf32> -> vector<4x6x8xf32>
    "tpu.trace_stop"() : () -> ()
    %17 = arith.negf %16 : vector<4x6x8xf32>
    %18 = math.exp %17 : vector<4x6x8xf32>
    %cst_13 = arith.constant 1.000000e+00 : f32
    %19 = vector.broadcast %cst_13 : f32 to vector<4x6x8xf32>
    %20 = arith.addf %19, %18 : vector<4x6x8xf32>
    %21 = arith.divf %19, %20 : vector<4x6x8xf32>
    %cst_14 = arith.constant 2.000000e+00 : f32
    %22 = vector.broadcast %cst_14 : f32 to vector<4x6x8xf32>
    %23 = arith.mulf %22, %21 : vector<4x6x8xf32>
    %cst_15 = arith.constant 1.000000e+00 : f32
    %24 = vector.broadcast %cst_15 : f32 to vector<4x6x8xf32>
    %25 = arith.subf %24, %23 : vector<4x6x8xf32>
    %26 = math.exp %25 : vector<4x6x8xf32>
    %cst_16 = arith.constant 1.000000e+00 : f32
    %27 = vector.broadcast %cst_16 : f32 to vector<4x6x8xf32>
    %28 = arith.addf %27, %26 : vector<4x6x8xf32>
    %29 = math.log %28 : vector<4x6x8xf32>
    %30 = arith.mulf %4, %29 : vector<4x6x8xf32>
    %31 = vector.shape_cast %30 : vector<4x6x8xf32> to vector<1x4x6x8xf32>
    %cst_17 = arith.constant dense<0.000000e+00> : vector<1xf32>
    %32 = vector.multi_reduction <add>, %31, %cst_17 [1, 2, 3] : vector<1x4x6x8xf32> to vector<1xf32>
    %33 = vector.shape_cast %32 : vector<1xf32> to vector<1x1x1x1xf32>
    %34 = vector.extract %33[0, 0, 0, 0] : f32 from vector<1x1x1x1xf32>
    %35 = vector.shape_cast %4 : vector<4x6x8xf32> to vector<1x4x6x8xf32>
    %cst_18 = arith.constant dense<0.000000e+00> : vector<1xf32>
    %36 = vector.multi_reduction <add>, %35, %cst_18 [1, 2, 3] : vector<1x4x6x8xf32> to vector<1xf32>
    %37 = vector.shape_cast %36 : vector<1xf32> to vector<1x1x1x1xf32>
    %38 = vector.extract %37[0, 0, 0, 0] : f32 from vector<1x1x1x1xf32>
    %39 = vector.shape_cast %3 : vector<6x8xf32> to vector<1x6x8xf32>
    %cst_19 = arith.constant dense<0.000000e+00> : vector<1xf32>
    %40 = vector.multi_reduction <add>, %39, %cst_19 [1, 2] : vector<1x6x8xf32> to vector<1xf32>
    %41 = vector.shape_cast %40 : vector<1xf32> to vector<1x1x1xf32>
    %42 = vector.extract %41[0, 0, 0] : f32 from vector<1x1x1xf32>
    %cst_20 = arith.constant 3.200000e+01 : f32
    %43 = arith.mulf %42, %cst_20 : f32
    %44 = arith.subf %43, %38 : f32
    %cst_21 = arith.constant 0.693147182 : f32
    %45 = arith.mulf %44, %cst_21 : f32
    %46 = arith.addf %34, %45 : f32
    %cst_22 = arith.constant 1.000000e+00 : f32
    %47 = arith.maximumf %43, %cst_22 : f32
    %48 = arith.divf %46, %47 : f32
    %c0_23 = arith.constant 0 : index
    %c0_24 = arith.constant 0 : index
    %49 = memref.load %arg7[%c0_23, %c0_24] : memref<1x1xf32, #tpu.memory_space<smem>>
    memref.store %48, %arg7[%c0_23, %c0_24] : memref<1x1xf32, #tpu.memory_space<smem>>
    %50 = arith.truncf %4 : vector<4x6x8xf32> to vector<4x6x8xbf16>
    "tpu.trace_start"() <{level = 10 : i32, message = "rbh,rhd->rbd"}> : () -> ()
    %cst_25 = arith.constant dense<0.000000e+00> : vector<4x6x32xf32>
    %51 = tpu.matmul %50, %11, %cst_25 {dimension_numbers = #tpu.dot_dimension_numbers<[2], [1], [1], [2], [0, 0, 0, 1, 1, 2], [0], [0]>} : vector<4x6x8xbf16>, vector<4x8x32xbf16>, vector<4x6x32xf32> -> vector<4x6x32xf32>
    "tpu.trace_stop"() : () -> ()
    %cst_26 = arith.constant dense<0.000000e+00> : vector<6x32xf32>
    %52 = vector.multi_reduction <add>, %51, %cst_26 [0] : vector<4x6x32xf32> to vector<6x32xf32>
    %cst_27 = arith.constant dense<0.000000e+00> : vector<6x8xf32>
    %53 = vector.multi_reduction <add>, %4, %cst_27 [0] : vector<4x6x8xf32> to vector<6x8xf32>
    %cst_28 = arith.constant dense<0.000000e+00> : vector<6xf32>
    %54 = vector.multi_reduction <add>, %53, %cst_28 [1] : vector<6x8xf32> to vector<6xf32>
    %55 = vector.shape_cast %54 : vector<6xf32> to vector<6x1xf32>
    %cst_29 = arith.constant 1.000000e+00 : f32
    %56 = vector.broadcast %cst_29 : f32 to vector<6x1xf32>
    %57 = arith.maximumf %55, %56 : vector<6x1xf32>
    %58 = vector.broadcast %57 : vector<6x1xf32> to vector<6x32xf32>
    %59 = arith.divf %52, %58 : vector<6x32xf32>
    %60 = arith.subf %59, %6 : vector<6x32xf32>
    %cst_30 = arith.constant 5.000000e-01 : f32
    %61 = vector.broadcast %cst_30 : f32 to vector<6x32xf32>
    %62 = arith.mulf %61, %60 : vector<6x32xf32>
    %cst_31 = arith.constant 0.000000e+00 : f32
    %63 = vector.broadcast %cst_31 : f32 to vector<6x1xf32>
    %64 = arith.cmpf ogt, %55, %63 : vector<6x1xf32>
    %cst_32 = arith.constant 0.000000e+00 : f32
    %65 = vector.shape_cast %64 : vector<6x1xi1> to vector<6x1xi1>
    %66 = vector.broadcast %65 : vector<6x1xi1> to vector<6x32xi1>
    %67 = vector.broadcast %cst_32 : f32 to vector<6x32xf32>
    %68 = arith.select %66, %62, %67 : vector<6x32xi1>, vector<6x32xf32>
    %cst_33 = arith.constant dense<0.000000e+00> : vector<8x32xf32>
    %69 = tpu.matmul %3, %68, %cst_33 {dimension_numbers = #tpu.dot_dimension_numbers<[0], [0], [1], [1], [0, 1, 1, 1], [], []>} : vector<6x8xf32>, vector<6x32xf32>, vector<8x32xf32> -> vector<8x32xf32>
    %70 = arith.addf %1, %69 : vector<8x32xf32>
    %c0_34 = arith.constant 0 : index
    %c0_35 = arith.constant 0 : index
    %71 = vector.load %arg8[%c0_34, %c0_35] : memref<8x32xf32, #tpu.memory_space<vmem>>, vector<8x32xf32>
    tpu.vector_store %arg8[%c0_34, %c0_35], %70 {strides = array<i32>} : memref<8x32xf32, #tpu.memory_space<vmem>>, vector<8x32xf32>,
    %cst_36 = arith.constant dense<0.000000e+00> : vector<6x8xf32>
    %72 = tpu.matmul %0, %70, %cst_36 {dimension_numbers = #tpu.dot_dimension_numbers<[1], [1], [0], [0], [0, 0, 1, 0], [], []>} : vector<6x32xf32>, vector<8x32xf32>, vector<6x8xf32> -> vector<6x8xf32>
    %73 = arith.mulf %0, %0 : vector<6x32xf32>
    %cst_37 = arith.constant dense<0.000000e+00> : vector<6xf32>
    %74 = vector.multi_reduction <add>, %73, %cst_37 [1] : vector<6x32xf32> to vector<6xf32>
    %75 = vector.shape_cast %74 : vector<6xf32> to vector<6x1xf32>
    %76 = arith.mulf %70, %70 : vector<8x32xf32>
    %cst_38 = arith.constant dense<0.000000e+00> : vector<8xf32>
    %77 = vector.multi_reduction <add>, %76, %cst_38 [1] : vector<8x32xf32> to vector<8xf32>
    %cst_39 = arith.constant 2.000000e+00 : f32
    %78 = vector.broadcast %cst_39 : f32 to vector<6x8xf32>
    %79 = arith.mulf %78, %72 : vector<6x8xf32>
    %80 = vector.broadcast %75 : vector<6x1xf32> to vector<6x8xf32>
    %81 = arith.subf %79, %80 : vector<6x8xf32>
    %82 = vector.shape_cast %77 : vector<8xf32> to vector<1x8xf32>
    %83 = vector.broadcast %82 : vector<1x8xf32> to vector<6x8xf32>
    %84 = arith.subf %81, %83 : vector<6x8xf32>
    %c0_40 = arith.constant 0 : index
    %c0_41 = arith.constant 0 : index
    %85 = vector.load %arg6[%c0_40, %c0_41] : memref<6x8xf32, #tpu.memory_space<vmem>>, vector<6x8xf32>
    tpu.vector_store %arg6[%c0_40, %c0_41], %84 {strides = array<i32>} : memref<6x8xf32, #tpu.memory_space<vmem>>, vector<6x8xf32>,
    return
  }
  func.func @transform_0(%arg0: i32) -> (i32, i32) {
    %c0_i32 = arith.constant 0 : i32
    %c0_i32_0 = arith.constant 0 : i32
    %c0_i32_1 = arith.constant 0 : i32
    return %c0_i32, %c0_i32_0 : i32, i32
  }
  func.func @transform_1(%arg0: i32) -> (i32, i32) {
    %c0_i32 = arith.constant 0 : i32
    %c0_i32_0 = arith.constant 0 : i32
    %c0_i32_1 = arith.constant 0 : i32
    return %c0_i32, %c0_i32_0 : i32, i32
  }
  func.func @transform_2(%arg0: i32) -> (i32, i32, i32) {
    %c0_i32 = arith.constant 0 : i32
    %c0_i32_0 = arith.constant 0 : i32
    %c0_i32_1 = arith.constant 0 : i32
    %c0_i32_2 = arith.constant 0 : i32
    return %c0_i32, %c0_i32_0, %c0_i32_1 : i32, i32, i32
  }
  func.func @transform_3(%arg0: i32) -> (i32, i32) {
    %c0_i32 = arith.constant 0 : i32
    %c0_i32_0 = arith.constant 0 : i32
    %c0_i32_1 = arith.constant 0 : i32
    return %c0_i32, %c0_i32_0 : i32, i32
  }
  func.func @transform_4(%arg0: i32) -> (i32, i32, i32) {
    %c0_i32 = arith.constant 0 : i32
    %c0_i32_0 = arith.constant 0 : i32
    %c0_i32_1 = arith.constant 0 : i32
    %c0_i32_2 = arith.constant 0 : i32
    return %c0_i32, %c0_i32_0, %c0_i32_1 : i32, i32, i32
  }
  func.func @transform_5(%arg0: i32) -> (i32, i32) {
    %c0_i32 = arith.constant 0 : i32
    %c0_i32_0 = arith.constant 0 : i32
    %c0_i32_1 = arith.constant 0 : i32
    return %c0_i32, %c0_i32_0 : i32, i32
  }
  func.func @transform_6(%arg0: i32) -> (i32, i32) {
    %c0_i32 = arith.constant 0 : i32
    %c0_i32_0 = arith.constant 0 : i32
    %c0_i32_1 = arith.constant 0 : i32
    return %c0_i32, %c0_i32_0 : i32, i32
  }
  func.func @transform_7(%arg0: i32) -> (i32, i32) {
    %c0_i32 = arith.constant 0 : i32
    %c0_i32_0 = arith.constant 0 : i32
    %c0_i32_1 = arith.constant 0 : i32
    return %c0_i32, %c0_i32_0 : i32, i32
  }
}

</mosaic_0001>

<bundles_post_ra>
// kernel: proto_forward.1
= control target key start
LH: loop header
LB: loop body
LE: loop exit
PB: predicated region body
PF: predicated region fallthrough
CT: control target
= control target key end

     0   :  { %13 = vsyncpa [#allocation3], 0  ;;  %s1626_s0 = inlined_call_operand.vmem [shape: f32[6,32], index: 0, kind: input, shape index: {}]   ;;  %s1627_s1 = inlined_call_operand.vmem [shape: f32[8,32], index: 1, kind: input, shape index: {}]   ;;  %s1628_s2 = inlined_call_operand.vmem [shape: bf16[4,32,32], index: 2, kind: input, shape index: {}]   ;;  %s1629_s3 = inlined_call_operand.vmem [shape: f32[6,8], index: 3, kind: input, shape index: {}]   ;;  %s1630_s4 = inlined_call_operand.vmem [shape: f32[4,6,8], index: 4, kind: input, shape index: {}]   ;;  %s1631_s5 = inlined_call_operand.hbm [shape: f32[6,8], index: 5, kind: output, shape index: {0}]   ;;  %s1632_s6 = inlined_call_operand.hbm [shape: f32[1,1], index: 6, kind: output, shape index: {1}]   ;;  %s1633_s7 = inlined_call_operand.hbm [shape: f32[8,32], index: 7, kind: output, shape index: {2}]  }
   0x1   :  { %14 = vsyncpa [#allocation4], 0  ;;  %v1414_v0 = vld [vmem:[%s1627_s1] sm:$0xff]  ;;  %v1365_v2 = vmov 0.0   ;;  %vm51_vm0 = vcmask 64512   ;;  %v1262_v4 = vld [vmem:[%s1628_s2 + $0x10] sm:$0xff]  }
   0x2   :  { %v1261_v1 = vld [vmem:[%s1628_s2] sm:$0xff]   ;;  %1152 = vmatprep.subr.mxu0 %v1365_v2  ;;  %1157 = vmatprep.subr.bf16.mxu1 %v1365_v2  ;;  %vm1366_vm1 = vmmov 0   ;;  %v1263_v5 = vld [vmem:[%s1628_s2 + $0x8] sm:$0xff]   ;;  %v1264_v6 = vld [vmem:[%s1628_s2 + $0x18] sm:$0xff]   ;;  %v50_v7 = vpack.c.bf16 %v1414_v0, %v1414_v0  ;;  %vm137_vm2 = vcmask 261120  }
   0x3   :  { %v1424_v3 = vld [vmem:[%s1629_s3] sm:$0x3f]  ;;  %1153 = vmatpush3.msra.mxu0 %v1414_v0  ;;  %1154 = vmatprep.mubr.msk.f32.mxu0 %vm1366_vm1, %v1365_v2 }
   0x4   :  { %1158 = vmatpush3.bf16.msra.mxu1 %v1261_v1  ;;  %1165 = vmatprep.subr.bf16.mxu0 %v1365_v2  ;;  %v1265_v8 = vld [vmem:[%s1628_s2 + $0x20] sm:$0xff]  }
   0x5   :  { %1155 = vmatmul.mubr.msk.f32.vlgmr.msra.gmra.mrb[0].mxu0 %vm51_vm0, %v1424_v3  ;;  %1159 = vmatprep.subr.bf16.mxu1 %v1365_v2 }
   0x6   :  { %1166 = vmatpush3.bf16.msra.mxu0 %v1262_v4  ;;  %1161 = vmatprep.mubr.msk.bf16.mxu1 %vm1366_vm1, %v1365_v2 }
   0x7   :  { %1167 = vmatprep.subr.bf16.mxu0 %v1365_v2  ;;  %1169 = vmatprep.mubr.msk.bf16.mxu0 %vm1366_vm1, %v1365_v2 }
   0x8   :  { %1160 = vmatpush3.bf16.msra.mxu1 %v1263_v5 }
   0x9   :  { %1173 = vmatprep.subr.bf16.mxu1 %v1365_v2 }
   0xa   :  { %15 = vsyncpa [#allocation7], 0  ;;  %1168 = vmatpush3.bf16.msra.mxu0 %v1264_v6  ;;  %v1266_v9 = vld [vmem:[%s1628_s2 + $0x30] sm:$0xff]   ;;  %v1267_v10 = vld [vmem:[%s1628_s2 + $0x28] sm:$0xff]   ;;  %vm573_vm3 = vcmask 62464   ;;  %vm634_vm4 = vcmask 1043456  }
   0xb   :  { %1162 = vmatmul.mubr.msk.bf16.vlgmr.msra.gmra.mrb[0].mxu1 %vm137_vm2, %v50_v7  ;;  %1181 = vmatprep.subr.bf16.mxu0 %v1365_v2  ;;  %v1268_v11 = vld [vmem:[%s1628_s2 + $0x38] sm:$0xff]   ;;  %v1482_v12 = vld [vmem:[%s1630_s4] sm:$0x3f]  ;;  %v1487_v13 = vld [vmem:[%s1630_s4 + $0x8] sm:$0x3f]  ;;  %vm812_vm5 = vcmask 259072  }
   0xc   :  { %1174 = vmatpush3.bf16.msra.mxu1 %v1265_v8  ;;  %1177 = vmatprep.mubr.msk.bf16.mxu1 %vm1366_vm1, %v1365_v2  ;;  %v1492_v14 = vld [vmem:[%s1630_s4 + $0x10] sm:$0x3f]  ;;  %v590_v15 = vsel %vm573_vm3, %v1482_v12, 0.0  ;;  %v591_v16 = vsel %vm573_vm3, %v1487_v13, 0.0  ;;  %v1503_v18 = vld [vmem:[%s1630_s4 + $0x18] sm:$0x3f]  ;;  %v627_v53 = vpack.c.bf16 %v1482_v12, %v1482_v12  ;;  %v628_v54 = vpack.c.bf16 %v1487_v13, %v1487_v13 }
   0xd   :  { %1170 = vmatmul.mubr.msk.bf16.vlgmr.msra.gmra.mrb[4].mxu0 %vm137_vm2, %v50_v7  ;;  %1175 = vmatprep.subr.bf16.mxu1 %v1365_v2  ;;  %v593_v17 = vsel %vm573_vm3, %v1492_v14, 0.0  ;;  %v592_v19 = vadd.f32 %v591_v16, %v590_v15  ;;  %v595_v20 = vsel %vm573_vm3, %v1503_v18, 0.0  ;;  %v629_v57 = vpack.c.bf16 %v1492_v14, %v1492_v14  ;;  %s1367_s30 = smov 1.0   ;;  %s1368_s10 = smov [#allocation6]  }
   0xe   :  { %1182 = vmatpush3.bf16.msra.mxu0 %v1266_v9  ;;  %1185 = vmatprep.mubr.msk.bf16.mxu0 %vm1366_vm1, %v1365_v2  ;;  %v630_v58 = vpack.c.bf16 %v1503_v18, %v1503_v18  ;;  %vm868_vm6 = vcmask 1045504   ;;  %vm864_vm8 = vcmask 48128   ;;  %s1072_s11 = sshll.u32 %s1368_s10, 4  ;;  %s1305_s16 = scalar_lea.hbm %s1632_s6, 16  ;;  %s1073_s11 = int_to_ptr.vmem [resolvable:$true] %s1072_s11 }
   0xf   :  { %1183 = vmatprep.subr.bf16.mxu0 %v1365_v2  ;;  %v594_v21 = vadd.f32 %v593_v17, %v592_v19  ;;  %p1306_p0 = scmp.ne.s32.totalorder %s1632_s6, %s1305_s16  ;;  %p1309_p1 = scmp.lt.u32.totalorder %s1305_s16, %s1632_s6 }
  0x10   :  { %1176 = vmatpush3.bf16.msra.mxu1 %v1267_v10 }
  0x11   :  { %1189 = vmatprep.subr.bf16.mxu1 %v1365_v2  ;;  %v596_v22 = vadd.f32 %v595_v20, %v594_v21  ;;  %p1311_p2 = pnand %p1309_p1, %p1306_p0 }
  0x12   :  { %1184 = vmatpush3.bf16.msra.mxu0 %v1268_v11 }
  0x13   :  { %1178 = vmatmul.mubr.msk.bf16.vlgmr.msra.gmra.mrb[4].mxu1 %vm137_vm2, %v50_v7  ;;  %1195 = vmatprep.subr.bf16.mxu0 %v1365_v2  ;;  %v820_v23 = vsel %vm573_vm3, %v596_v22, 0.0 }
  0x14   :  { %1191 = vmatprep.mubr.msk.bf16.mxu1 %vm1366_vm1, %v1365_v2  ;;  %597 = vadd.xlane.f32.xlu1 %v596_v22 }
  0x15   :  { %1186 = vmatmul.mubr.msk.bf16.vlgmr.msra.gmra.mrb[8].mxu0 %vm137_vm2, %v50_v7  ;;  %821 = vadd.xlane.f32.xlu0 %v820_v23 }
  0x16   :  { %1197 = vmatprep.mubr.msk.bf16.mxu0 %vm1366_vm1, %v1365_v2 }
  0x42   :  { %832 = vxpose.xlu0.b32.start.end [1/1] (short) (narrow) %v1424_v3, 8 }
  0xa2   :  { %v1561_v19 = vpop.xlane.xlu0 %821 }
  0xa3   :  { %vm828_vm7 = vcmp.gt.f32.partialorder %v1561_v19, 0.0 }
  0xd8   :  { %v1509_v24 = vpop.f32.mrb[0].mxu0 }
  0xd9   :  { %v1156_v25 = vpop.f32.mrb[1].mxu0  ;;  %v341_v39 = vpack.c.bf16 %v1509_v24, %v1509_v24 }
  0xde   :  { %v175_v26 = vpop.f32.mrb[0].mxu1 }
  0xdf   :  { %v337_v27 = vpack.c.bf16 %v175_v26, %v175_v26  ;;  %v1163_v28 = vpop.f32.mrb[1].mxu1  ;;  %v823_v26 = vmax.f32 %v1561_v19, 1.0 }
  0xe0   :  { %v227_v29 = vpop.f32.mrb[4].mxu0  ;;  %v178_v30 = vpop.f32.mrb[2].mxu1 }
  0xe1   :  { %v346_v31 = vsel %vm137_vm2, %v337_v27, 0  ;;  %v338_v32 = vpack.c.bf16 %v227_v29, %v227_v29  ;;  %v1171_v33 = vpop.f32.mrb[5].mxu0  ;;  %v1164_v34 = vpop.f32.mrb[3].mxu1  ;;  %v635_v51 = vsel %vm634_vm4, %v337_v27, 0 }
  0xe2   :  { %v230_v35 = vpop.f32.mrb[6].mxu0  ;;  %1190 = vmatpush3.bf16.xpose.msra.mxu1 %v346_v31 }
  0xe3   :  { %v389_v36 = vsel %vm137_vm2, %v338_v32, 0  ;;  %v1172_v37 = vpop.f32.mrb[7].mxu0  ;;  %1201 = vmatprep.subr.bf16.mxu1 %v1365_v2  ;;  %v680_v52 = vsel %vm634_vm4, %v338_v32, 0 }
  0xe4   :  { %1196 = vmatpush3.bf16.xpose.msra.mxu0 %v389_v36 }
  0xe5   :  { %1207 = vmatprep.subr.bf16.mxu0 %v1365_v2 }
  0xe6   :  { %v279_v38 = vpop.f32.mrb[4].mxu1 }
  0xe7   :  { %v339_v40 = vpack.c.bf16 %v279_v38, %v279_v38  ;;  %v1179_v41 = vpop.f32.mrb[5].mxu1 }
  0xe8   :  { %v331_v42 = vpop.f32.mrb[8].mxu0  ;;  %v282_v43 = vpop.f32.mrb[6].mxu1 }
  0xe9   :  { %v432_v44 = vsel %vm137_vm2, %v339_v40, 0  ;;  %v340_v45 = vpack.c.bf16 %v331_v42, %v331_v42  ;;  %v1187_v46 = vpop.f32.mrb[9].mxu0  ;;  %v1180_v47 = vpop.f32.mrb[7].mxu1  ;;  %1192 = vmatmul.mubr.msk.bf16.vlgmr.msra.gmra.mrb[8].mxu1 %vm137_vm2, %v341_v39  ;;  %v725_v55 = vsel %vm634_vm4, %v339_v40, 0 }
  0xea   :  { %v334_v48 = vpop.f32.mrb[10].mxu0  ;;  %1202 = vmatpush3.bf16.xpose.msra.mxu1 %v432_v44  ;;  %1203 = vmatprep.mubr.msk.bf16.mxu1 %vm1366_vm1, %v1365_v2 }
  0xeb   :  { %v475_v49 = vsel %vm137_vm2, %v340_v45, 0  ;;  %v1188_v50 = vpop.f32.mrb[11].mxu0  ;;  %1198 = vmatmul.mubr.msk.bf16.vlgmr.msra.gmra.mrb[12].mxu0 %vm137_vm2, %v341_v39  ;;  %1213 = vmatprep.subr.bf16.mxu1 %v1365_v2  ;;  %v770_v56 = vsel %vm634_vm4, %v340_v45, 0 }
  0xec   :  { %1208 = vmatpush3.bf16.xpose.msra.mxu0 %v475_v49  ;;  %1209 = vmatprep.mubr.msk.bf16.mxu0 %vm1366_vm1, %v1365_v2 }
  0xed   :  { %1219 = vmatprep.subr.bf16.mxu0 %v1365_v2 }
  0xf1   :  { %1204 = vmatmul.mubr.msk.bf16.vlgmr.msra.gmra.mrb[12].mxu1 %vm137_vm2, %v341_v39 }
  0xf2   :  { %1214 = vmatpush3.bf16.msra.mxu1 %v635_v51  ;;  %1215 = vmatprep.mubr.msk.bf16.mxu1 %vm1366_vm1, %v1365_v2 }
  0xf3   :  { %1210 = vmatmul.mubr.msk.bf16.vlgmr.msra.gmra.mrb[16].mxu0 %vm137_vm2, %v341_v39  ;;  %1225 = vmatprep.subr.bf16.mxu1 %v1365_v2 }
  0xf4   :  { %1220 = vmatpush3.bf16.msra.mxu0 %v680_v52  ;;  %1221 = vmatprep.mubr.msk.bf16.mxu0 %vm1366_vm1, %v1365_v2 }
  0xf5   :  { %1231 = vmatprep.subr.bf16.mxu0 %v1365_v2 }
  0xf9   :  { %1216 = vmatmul.mubr.msk.bf16.vlgmr.msra.gmra.mrb[16].mxu1 %vm51_vm0, %v627_v53 }
  0xfa   :  { %1226 = vmatpush3.bf16.msra.mxu1 %v725_v55  ;;  %1227 = vmatprep.mubr.msk.bf16.mxu1 %vm1366_vm1, %v1365_v2 }
  0xfb   :  { %1222 = vmatmul.mubr.msk.bf16.vlgmr.msra.gmra.mrb[20].mxu0 %vm51_vm0, %v628_v54  ;;  %1237 = vmatprep.subr.mxu1 %v1365_v2 }
  0xfc   :  { %1232 = vmatpush3.bf16.msra.mxu0 %v770_v56  ;;  %1233 = vmatprep.mubr.msk.bf16.mxu0 %vm1366_vm1, %v1365_v2 }
  0xfd   :  { %1242 = vmatprep.subr.mxu0 %v1365_v2 }
 0x101   :  { %1228 = vmatmul.mubr.msk.bf16.vlgmr.msra.gmra.mrb[20].mxu1 %vm51_vm0, %v629_v57 }
 0x102   :  { %1239 = vmatprep.mubr.msk.f32.mxu1 %vm1366_vm1, %v1365_v2 }
 0x103   :  { %1234 = vmatmul.mubr.msk.bf16.vlgmr.msra.gmra.mrb[24].mxu0 %vm51_vm0, %v630_v58 }
 0x104   :  { %1244 = vmatprep.mubr.msk.f32.mxu0 %vm1366_vm1, %v1365_v2 }
 0x1bc   :  { %v382_v59 = vpop.f32.mrb[8].mxu1 }
 0x1bd   :  { %v1106_v60 = vmul.f32 -1.442695, %v382_v59  ;;  %v1193_v61 = vpop.f32.mrb[9].mxu1 }
 0x1be   :  { %v425_v62 = vpop.f32.mrb[12].mxu0  ;;  %v385_v63 = vpop.f32.mrb[10].mxu1 }
 0x1bf   :  { %1269 = vpow2.f32 %v1106_v60  ;;  %v1107_v1 = vmul.f32 -1.442695, %v425_v62  ;;  %v1199_v4 = vpop.f32.mrb[13].mxu0  ;;  %v1194_v5 = vpop.f32.mrb[11].mxu1 }
 0x1c0   :  { %v428_v6 = vpop.f32.mrb[14].mxu0 }
 0x1c1   :  { %1271 = vpow2.f32 %v1107_v1  ;;  %v1200_v7 = vpop.f32.mrb[15].mxu0 }
 0x1c4   :  { %v468_v8 = vpop.f32.mrb[12].mxu1 }
 0x1c5   :  { %v1108_v9 = vmul.f32 -1.442695, %v468_v8  ;;  %v1205_v10 = vpop.f32.mrb[13].mxu1  ;;  %v848_v8 = vpop.trf.xlu0 }
 0x1c6   :  { %v511_v11 = vpop.f32.mrb[16].mxu0  ;;  %v471_v15 = vpop.f32.mrb[14].mxu1 }
 0x1c7   :  { %1273 = vpow2.f32 %v1108_v9  ;;  %v1109_v16 = vmul.f32 -1.442695, %v511_v11  ;;  %v1211_v2 = vpop.f32.mrb[17].mxu0  ;;  %v1206_v17 = vpop.f32.mrb[15].mxu1 }
 0x1c8   :  { %v514_v20 = vpop.f32.mrb[18].mxu0 }
 0x1c9   :  { %v1270_v21 = vpop.eup %1269  ;;  %1275 = vpow2.f32 %v1109_v16  ;;  %v1212_v22 = vpop.f32.mrb[19].mxu0 }
 0x1ca   :  { %v529_v23 = vadd.f32 1.0, %v1270_v21 }
 0x1cb   :  { %v1272_v25 = vpop.eup %1271 }
 0x1cc   :  { %1277 = vrcp.f32 %v529_v23  ;;  %v530_v27 = vadd.f32 1.0, %v1272_v25  ;;  %v671_v28 = vpop.f32.mrb[16].mxu1 }
 0x1cd   :  { %v1217_v29 = vpop.f32.mrb[17].mxu1  ;;  %v813_v32 = vsel %vm812_vm5, %v671_v28, 0.0 }
 0x1ce   :  { %1279 = vrcp.f32 %v530_v27  ;;  %v716_v30 = vpop.f32.mrb[20].mxu0  ;;  %v674_v31 = vpop.f32.mrb[18].mxu1 }
 0x1cf   :  { %1281 = vrcp.f32 %v823_v26  ;;  %v814_v33 = vsel %vm812_vm5, %v716_v30, 0.0  ;;  %v1223_v34 = vpop.f32.mrb[21].mxu0  ;;  %v1218_v35 = vpop.f32.mrb[19].mxu1 }
 0x1d0   :  { %v815_v36 = vadd.f32 %v814_v33, %v813_v32  ;;  %v719_v37 = vpop.f32.mrb[22].mxu0 }
 0x1d1   :  { %v1274_v38 = vpop.eup %1273  ;;  %v1224_v39 = vpop.f32.mrb[23].mxu0 }
 0x1d2   :  { %v531_v40 = vadd.f32 1.0, %v1274_v38 }
 0x1d3   :  { %v1276_v41 = vpop.eup %1275 }
 0x1d4   :  { %1283 = vrcp.f32 %v531_v40  ;;  %v532_v42 = vadd.f32 1.0, %v1276_v41  ;;  %v761_v43 = vpop.f32.mrb[20].mxu1 }
 0x1d5   :  { %v816_v44 = vsel %vm812_vm5, %v761_v43, 0.0  ;;  %v1229_v45 = vpop.f32.mrb[21].mxu1 }
 0x1d6   :  { %v1278_v46 = vpop.eup %1277  ;;  %1285 = vrcp.f32 %v532_v42  ;;  %v817_v47 = vadd.f32 %v816_v44, %v815_v36  ;;  %v806_v48 = vpop.f32.mrb[24].mxu0  ;;  %v27_v45 = vld [vmem:[%s1626_s0] sm:$0x3f] }
 0x1d7   :  { %v764_v49 = vpop.f32.mrb[22].mxu1  ;;  %v541_v50 = vmul.f32 2.0, %v1278_v46  ;;  %v818_v51 = vsel %vm812_vm5, %v806_v48, 0.0  ;;  %v1235_v52 = vpop.f32.mrb[25].mxu0  ;;  %v1020_v46 = vmul.f32 %v27_v45, %v27_v45 }
 0x1d8   :  { %v1230_v53 = vpop.f32.mrb[23].mxu1  ;;  %v1280_v54 = vpop.eup %1279  ;;  %v819_v55 = vadd.f32 %v818_v51, %v817_v47 }
 0x1d9   :  { %v809_v56 = vpop.f32.mrb[26].mxu0  ;;  %v1282_v57 = vpop.eup %1281  ;;  %v545_v58 = vsub.f32 1.0, %v541_v50  ;;  %v542_v59 = vmul.f32 2.0, %v1280_v54 }
 0x1da   :  { %v1236_v60 = vpop.f32.mrb[27].mxu0  ;;  %v825_v61 = vmul.f32 %v1282_v57, %v819_v55 }
 0x1db   :  { %v549_v62 = vmul.f32 1.442695, %v545_v58  ;;  %v546_v63 = vsub.f32 1.0, %v542_v59 }
 0x1dc   :  { %v826_v1 = vsub.f32 %v825_v61, %v1509_v24 }
 0x1dd   :  { %1287 = vpow2.f32 %v549_v62  ;;  %v551_v4 = vmul.f32 1.442695, %v546_v63 }
 0x1de   :  { %v1284_v5 = vpop.eup %1283  ;;  %v827_v6 = vmul.f32 0.5, %v826_v1 }
 0x1df   :  { %1289 = vpow2.f32 %v551_v4  ;;  %v543_v7 = vmul.f32 2.0, %v1284_v5 }
 0x1e0   :  { %v1286_v9 = vpop.eup %1285  ;;  %v831_v10 = vsel %vm828_vm7, %v827_v6, 0.0 }
 0x1e1   :  { %v547_v11 = vsub.f32 1.0, %v543_v7  ;;  %v544_v15 = vmul.f32 2.0, %v1286_v9  ;;  %1238 = vmatpush3.msk.msra.mxu1 %vm868_vm6, %v831_v10 }
 0x1e2   :  { %1240 = vmatmul.mubr.msk.f32.vlgmr.msra.gmra.mrb[24].mxu1 %vm864_vm8, %v848_v8 }
 0x1e3   :  { %v553_v16 = vmul.f32 1.442695, %v547_v11  ;;  %v548_v2 = vsub.f32 1.0, %v544_v15 }
 0x1e5   :  { %1291 = vpow2.f32 %v553_v16  ;;  %v555_v24 = vmul.f32 1.442695, %v548_v2 }
 0x1e7   :  { %v1288_v17 = vpop.eup %1287  ;;  %1293 = vpow2.f32 %v555_v24 }
 0x1e8   :  { %v557_v20 = vadd.f32 1.0, %v1288_v17 }
 0x1e9   :  { %v1290_v21 = vpop.eup %1289 }
 0x1ea   :  { %1295 = vlog2.f32 %v557_v20  ;;  %v558_v22 = vadd.f32 1.0, %v1290_v21 }
 0x1ec   :  { %1297 = vlog2.f32 %v558_v22 }
 0x1ef   :  { %v1292_v19 = vpop.eup %1291 }
 0x1f0   :  { %v559_v23 = vadd.f32 1.0, %v1292_v19 }
 0x1f1   :  { %v1294_v25 = vpop.eup %1293 }
 0x1f2   :  { %v560_v26 = vadd.f32 1.0, %v1294_v25  ;;  %1299 = vlog2.f32 %v559_v23 }
 0x1f4   :  { %v1296_v27 = vpop.eup %1295  ;;  %1301 = vlog2.f32 %v560_v26 }
 0x1f5   :  { %v562_v28 = vmul.f32 0.6931472, %v1296_v27 }
 0x1f6   :  { %v1298_v29 = vpop.eup %1297 }
 0x1f7   :  { %v564_v30 = vmul.f32 0.6931472, %v1298_v29  ;;  %v569_v31 = vmul.f32 %v562_v28, %v1482_v12 }
 0x1f9   :  { %v570_v32 = vmul.f32 %v564_v30, %v1487_v13  ;;  %v574_v33 = vsel %vm573_vm3, %v569_v31, 0.0  ;;  %v606_v13 = vsel %vm573_vm3, %v1424_v3, 0.0 }
 0x1fb   :  { %v575_v34 = vsel %vm573_vm3, %v570_v32, 0.0 }
 0x1fc   :  { %v1300_v35 = vpop.eup %1299  ;;  %v576_v36 = vadd.f32 %v575_v34, %v574_v33 }
 0x1fd   :  { %v566_v37 = vmul.f32 0.6931472, %v1300_v35 }
 0x1fe   :  { %v1302_v38 = vpop.eup %1301 }
 0x1ff   :  { %v568_v39 = vmul.f32 0.6931472, %v1302_v38  ;;  %v571_v40 = vmul.f32 %v566_v37, %v1492_v14  ;;  %v1021_v14 = vsel %vm812_vm5, %v1020_v46, 0.0 }
 0x201   :  { %v572_v41 = vmul.f32 %v568_v39, %v1503_v18  ;;  %v577_v42 = vsel %vm573_vm3, %v571_v40, 0.0  ;;  %v598_v18 = vpop.xlane.xlu1 %597 }
 0x202   :  { %v578_v43 = vadd.f32 %v577_v42, %v576_v36  ;;  %v599_v47 = vrot.slane %v598_v18, 4 }
 0x203   :  { %v579_v12 = vsel %vm573_vm3, %v572_v41, 0.0 }
 0x204   :  { %v580_v44 = vadd.f32 %v579_v12, %v578_v43  ;;  %v600_v48 = vadd.f32 %v599_v47, %v598_v18 }
 0x206   :  { %581 = vadd.xlane.f32.xlu1 %v580_v44  ;;  %v601_v49 = vrot.slane %v600_v48, 2 }
 0x208   :  { %v602_v52 = vadd.f32 %v601_v49, %v600_v48 }
 0x20a   :  { %607 = vadd.xlane.f32.xlu1 %v606_v13  ;;  %v603_v56 = vrot.slane %v602_v52, 1 }
 0x20c   :  { %v604_v61 = vadd.f32 %v603_v56, %v602_v52 }
 0x20e   :  { %1022 = vadd.xlane.f32.xlu1 %v1021_v14 }
 0x293   :  { %v582_v50 = vpop.xlane.xlu1 %581 }
 0x294   :  { %v583_v51 = vrot.slane %v582_v50, 4 }
 0x296   :  { %v584_v53 = vadd.f32 %v583_v51, %v582_v50 }
 0x297   :  { %v608_v54 = vpop.xlane.xlu1 %607 }
 0x298   :  { %v585_v55 = vrot.slane %v584_v53, 2  ;;  %v609_v3 = vrot.slane %v608_v54, 4 }
 0x29a   :  { %v610_v57 = vadd.f32 %v609_v3, %v608_v54  ;;  %v586_v58 = vadd.f32 %v585_v55, %v584_v53 }
 0x29c   :  { %v611_v59 = vrot.slane %v610_v57, 2  ;;  %v587_v60 = vrot.slane %v586_v58, 1 }
 0x29e   :  { %v588_v62 = vadd.f32 %v587_v60, %v586_v58  ;;  %v612_v63 = vadd.f32 %v611_v59, %v610_v57 }
 0x2a0   :  { %1247 = vpush %v588_v62  ;;  %v613_v1 = vrot.slane %v612_v63, 1 }
 0x2a1   :  { %1249 = vpush %v604_v61 }
 0x2a2   :  { %v614_v4 = vadd.f32 %v613_v1, %v612_v63 }
 0x2a4   :  { %1251 = vpush %v614_v4 }
 0x2b5   :  { %v938_v5 = vpop.f32.mrb[24].mxu1 }
 0x2b6   :  { %v942_v6 = vadd.f32 %v938_v5, %v1414_v0  ;;  %v1241_v7 = vpop.f32.mrb[25].mxu1 }
 0x2b8   :  { %943 = vst.msk [vmem:[#allocation6] sm:$0xff] %vm137_vm2, %v942_v6  ;;  %1243 = vmatpush3.xpose.msk.msra.mxu0 %vm137_vm2, %v942_v6  ;;  %v1024_v8 = vmul.f32 %v942_v6, %v942_v6 }
 0x2ba   :  { %v1025_v9 = vsel %vm137_vm2, %v1024_v8, 0.0 }
 0x2bb   :  { %1245 = vmatmul.mubr.msk.f32.vlgmr.msra.gmra.mrb[2].mxu0 %vm137_vm2, %v27_v45  ;;  %1026 = vadd.xlane.f32.xlu1 %v1025_v9 }
 0x2d1   :  { %s1248_s0 = spop %1247 }
 0x2d2   :  { %s1250_s27 = spop %1249 }
 0x2d5   :  { %s1252_s28 = spop %1251 }
 0x2d6   :  { %s616_s29 = smul.f32 32.0, %s1252_s28 }
 0x2d8   :  { %s620_s8 = smax.f32 %s1367_s30, %s616_s29  ;;  %s617_s1 = ssub.f32 %s616_s29, %s1250_s27 }
 0x2d9   :  { %v621_v10 = vstv %s620_s8 }
 0x2da   :  { %1303 = vrcp.f32 %v621_v10  ;;  %s618_s9 = smul.f32 0.6931472, %s617_s1 }
 0x2dc   :  { %s619_s3 = sadd.f32 %s1248_s0, %s618_s9 }
 0x2e4   :  { %v1304_v0 = vpop.eup %1303 }
 0x2e5   :  { %1253 = vpush %v1304_v0 }
 0x316   :  { %s1254_s12 = spop %1253 }
 0x317   :  { %s624_s13 = smul.f32 %s1254_s12, %s619_s3 }
 0x319   :  { %626 = sst [smem:[#allocation5]] %s624_s13 }
 0x31a   :  { %1314 = shalt.err (!%p1311_p2)
}
 0x31b   :  { %s1369_s20 = smov [#allocation5]   ;;  %s1315_s23 = scalar_lea.vmem %s1073_s11, 128 }
 0x31c   :  { %1065 = dma.smem_to_hbm %s1369_s20, 16, %s1632_s6, [#allocation4]  }
 0x31d   :  { %p1316_p3 = scmp.ne.s32.totalorder %s1073_s11, %s1315_s23  ;;  %p1320_p4 = scmp.lt.s32.totalorder %s1073_s11, %s1073_s11 }
 0x31e   :  { %p1321_p5 = scmp.lt.s32.totalorder %s1315_s23, %s1315_s23 }
 0x320   :  { %p1322_p6 = por %p1321_p5, %p1320_p4 }
 0x322   :  { %p1323_p7 = pnand %p1322_p6, %p1316_p3 }
 0x324   :  { %1326 = shalt.err (!%p1323_p7)
}
 0x325   :  { %s1327_s4 = scalar_lea.hbm %s1633_s7, 128 }
 0x326   :  { %p1328_p8 = scmp.ne.s32.totalorder %s1633_s7, %s1327_s4  ;;  %p1331_p9 = scmp.lt.u32.totalorder %s1327_s4, %s1633_s7 }
 0x328   :  { %p1333_p10 = pnand %p1331_p9, %p1328_p8 }
 0x32a   :  { %1336 = shalt.err (!%p1333_p10)
}
 0x32b   :  { %1075 = dma.vmem_to_hbm [thread:$0]  %s1073_s11, 128, %s1633_s7, [#allocation7]   ;;  %v1031_v11 = vlaneseq  ;;  %v1023_v15 = vpop.xlane.xlu1 %1022 }
 0x32c   :  { %s1370_s30 = smov [#allocation2]  }
 0x32d   :  { %v1032_v16 = vand.u32 127, %v1031_v11  ;;  %v1034_v2 = vshrl.u32 %v1031_v11, 7  ;;  %s1054_s8 = sshll.u32 %s1370_s30, 4  ;;  %s1055_s8 = int_to_ptr.vmem [resolvable:$true] %s1054_s8 }
 0x32e   :  { %s1337_s1 = scalar_lea.vmem %s1055_s8, 128  ;;  %p1342_p12 = scmp.lt.s32.totalorder %s1055_s8, %s1055_s8 }
 0x32f   :  { %v1035_v24 = vsub.s32 %v1032_v16, %v1034_v2  ;;  %p1338_p11 = scmp.ne.s32.totalorder %s1055_s8, %s1337_s1  ;;  %p1343_p13 = scmp.lt.s32.totalorder %s1337_s1, %s1337_s1 }
 0x331   :  { %p1344_p0 = por %p1343_p13, %p1342_p12 }
 0x333   :  { %p1345_p1 = pnand %p1344_p0, %p1338_p11 }
 0x348   :  { %v1027_v17 = vpop.xlane.xlu1 %1026 }
 0x349   :  { %v1036_v19 = vrot.slane %v1027_v17, %v1035_v24 }
 0x38e   :  { %v1016_v20 = vpop.f32.mrb[2].mxu0 }
 0x38f   :  { %v1028_v21 = vmul.f32 2.0, %v1016_v20  ;;  %v1246_v22 = vpop.f32.mrb[3].mxu0 }
 0x391   :  { %v1029_v23 = vsub.f32 %v1028_v21, %v1023_v15 }
 0x393   :  { %v1046_v25 = vsub.f32 %v1029_v23, %v1036_v19 }
 0x395   :  { %1047 = vst.msk [vmem:[#allocation2] sm:$0x3f] %vm573_vm3, %v1046_v25 }
 0x396   :  { %1348 = shalt.err (!%p1345_p1)
}
 0x397   :  { %s1349_s3 = scalar_lea.hbm %s1631_s5, 128 }
 0x398   :  { %p1350_p2 = scmp.ne.s32.totalorder %s1631_s5, %s1349_s3  ;;  %p1353_p3 = scmp.lt.u32.totalorder %s1349_s3, %s1631_s5 }
 0x39a   :  { %p1355_p4 = pnand %p1353_p3, %p1350_p2 }
 0x39c   :  { %1358 = shalt.err (!%p1355_p4)
}
 0x39d   :  { %1057 = dma.vmem_to_hbm [thread:$0]  %s1055_s8, 128, %s1631_s5, [#allocation3]  }
 0x39e   :  { %1359 = dma.done.wait [#allocation3], 128  }
 0x39f   :  { %1360 = vsyncadd [#allocation3], 4294967168 }
 0x3a0   :  { %1361 = dma.done.wait [#allocation4], 16  }
 0x3a1   :  { %1362 = vsyncadd [#allocation4], 4294967280 }
 0x3a2   :  { %1363 = dma.done.wait [#allocation7], 128  }
 0x3a3   :  { %1364 = vsyncadd [#allocation7], 4294967168 }
 0x3a4   :  { %1085 = sfence }
 0x3a5   :  { %1086 = vsyncpa [#allocation3], 1 }
 0x3a6   :  { %1087 = vsyncpa [#allocation7], 1 }
 0x3a7   :  { %1088 = vsyncpa [#allocation4], 1 }

</bundles_post_ra>
